<compile_context>
chip_gen: v7x
topology: tpu7x:2x2x1
jax: 0.10.0
libtpu: 0.0.40
codegen_flags: <defaults>
</compile_context>

<pallas_src>
import jax
import jax.numpy as jnp
from jax.experimental import pallas as pl
from jax.experimental.pallas import tpu as pltpu


def _round_up(n, m):
    return ((n + m - 1) // m) * m


def dqn_kernel(x_ref, w1_ref, b1_ref, w2_ref, b2_ref, w3_ref, b3_ref, o_ref):
    x = x_ref[...]                                       # (tb, k_pad), f32

    # fc1 + ReLU (MXU; contraction dim zero-padded in the wrapper).
    h1 = jnp.dot(x.astype(w1_ref.dtype), w1_ref[...],
                 preferred_element_type=jnp.float32) + b1_ref[...]
    h1 = jnp.maximum(h1, 0.0)

    # fc2 + ReLU (MXU, f32 accumulate; operands cast to the weight dtype).
    h2 = jnp.dot(h1.astype(w2_ref.dtype), w2_ref[...],
                 preferred_element_type=jnp.float32) + b2_ref[...]
    h2 = jnp.maximum(h2, 0.0)

    # fc3: compute at MXU-friendly padded width, store only action_dim columns
    # (narrow masked store; minimal HBM writeback bytes).
    out = jnp.dot(h2.astype(w3_ref.dtype), w3_ref[...],
                  preferred_element_type=jnp.float32) + b3_ref[...]
    o_ref[...] = out[:, :o_ref.shape[1]].astype(o_ref.dtype)


def dqn_forward(x, params, *, block_batch=1024, weight_dtype=jnp.bfloat16):
    """x: [batch, state_dim] f32. params: (w1,b1,w2,b2,w3,b3), weights stored [in,out]."""
    w1, b1, w2, b2, w3, b3 = params
    batch, state_dim = x.shape
    hidden = w1.shape[1]
    action_dim = w3.shape[1]

    # Normalize biases to (1, features); bias math stays f32.
    b1 = jnp.asarray(b1, jnp.float32).reshape(1, hidden)
    b2 = jnp.asarray(b2, jnp.float32).reshape(1, hidden)
    b3 = jnp.asarray(b3, jnp.float32).reshape(1, action_dim)

    # Pad the tiny contraction (state_dim) up to a sublane-friendly >= 8 so fc1
    # runs on the MXU; zero padding contributes nothing to the result.
    k_pad = _round_up(max(state_dim, 8), 8)
    if k_pad != state_dim:
        x = jnp.pad(x, ((0, 0), (0, k_pad - state_dim)))
        w1 = jnp.pad(w1, ((0, k_pad - state_dim), (0, 0)))

    # fc3 weights padded to a 128-lane multiple only for MXU-shape friendliness;
    # the kernel stores just `action_dim` columns (8 B/row, not 512 B/row).
    n_pad = _round_up(action_dim, 128)
    if n_pad != action_dim:
        w3 = jnp.pad(w3, ((0, 0), (0, n_pad - action_dim)))
        b3 = jnp.pad(b3, ((0, 0), (0, n_pad - action_dim)))

    # bf16 weights by default (v6e/v7x MXU-native, halves weight DMA); biases,
    # accumulation and activations remain f32.
    w1 = jnp.asarray(w1).astype(weight_dtype)
    w2 = jnp.asarray(w2).astype(weight_dtype)
    w3 = jnp.asarray(w3).astype(weight_dtype)

    # Batch tiling: one big block when the batch fits (no grid-step overhead,
    # minimal row padding); otherwise split into near-equal multiple-of-8 blocks.
    if batch <= block_batch:
        tb = _round_up(batch, 8)
        steps = 1
    else:
        steps = -(-batch // block_batch)
        tb = _round_up(-(-batch // steps), 8)
        steps = -(-batch // tb)
    padded_batch = tb * steps
    if padded_batch != batch:
        x = jnp.pad(x, ((0, padded_batch - batch), (0, 0)))

    # Weights/biases: constant index_map -> block stays resident, not re-DMA'd.
    const = lambda a: pl.BlockSpec(a.shape, lambda i: (0,) * a.ndim)

    out = pl.pallas_call(
        dqn_kernel,
        out_shape=jax.ShapeDtypeStruct((padded_batch, action_dim), jnp.float32),
        grid=(steps,),
        in_specs=[
            pl.BlockSpec((tb, k_pad), lambda i: (i, 0)),
            const(w1), const(b1), const(w2), const(b2), const(w3), const(b3),
        ],
        out_specs=pl.BlockSpec((tb, action_dim), lambda i: (i, 0)),
        compiler_params=pltpu.CompilerParams(
            dimension_semantics=("parallel",),  # batch axis sharded across TCs (v7x)
        ),
    )(x, w1, b1, w2, b2, w3, b3)

    return out[:batch]


def init_linear(key, fan_in, fan_out):
    # Deterministic init mimicking torch.nn.Linear default (uniform +/- 1/sqrt(fan_in)).
    kw, kb = jax.random.split(key)
    bound = 1.0 / jnp.sqrt(jnp.float32(fan_in))
    w = jax.random.uniform(kw, (fan_in, fan_out), jnp.float32, -bound, bound)
    b = jax.random.uniform(kb, (fan_out,), jnp.float32, -bound, bound)
    return w, b


if __name__ == "__main__":
    state_dim = 4      # e.g. CartPole observation
    action_dim = 2
    hidden = 128       # fixed by the DQN module

    key = jax.random.PRNGKey(0)
    k_x, k1, k2, k3 = jax.random.split(key, 4)

    w1, b1 = init_linear(k1, state_dim, hidden)
    w2, b2 = init_linear(k2, hidden, hidden)
    w3, b3 = init_linear(k3, hidden, action_dim)
    params = (w1, b1, w2, b2, w3, b3)

    def ref_forward(xv):
        h = jnp.maximum(xv @ w1 + b1, 0.0)
        h = jnp.maximum(h @ w2 + b2, 0.0)
        return h @ w3 + b3

    # Small batch (typical action-selection call), f32 weights: tight tolerance.
    x_small = jax.random.normal(k_x, (8, state_dim), jnp.float32)
    out_f32 = jax.block_until_ready(
        dqn_forward(x_small, params, weight_dtype=jnp.float32))
    assert out_f32.shape == (8, action_dim)
    assert jnp.allclose(out_f32, ref_forward(x_small), atol=1e-5, rtol=1e-5)

    # Default bf16-weight path (v6e/v7x MXU-native); f32 accumulation keeps it close.
    out_bf16 = jax.block_until_ready(dqn_forward(x_small, params))
    assert jnp.allclose(out_bf16, ref_forward(x_small), atol=5e-2, rtol=5e-2)

    # Non-multiple batch with a small block cap exercises the multi-step grid
    # and the near-equal block-splitting / row-padding path.
    x_big = jax.random.normal(k_x, (260, state_dim), jnp.float32)
    out_big = jax.block_until_ready(
        dqn_forward(x_big, params, block_batch=128, weight_dtype=jnp.float32))
    assert out_big.shape == (260, action_dim)
    assert jnp.allclose(out_big, ref_forward(x_big), atol=1e-4, rtol=1e-4)

    # TODO(synk): replay buffer / epsilon-greedy / optimizer from train.py are host-side
    # training logic with no kernel equivalent; only the DQN forward is implemented here.
    print("KERNEL_OK")
</pallas_src>

<mosaic_0001>
module attributes {stable_mosaic.version = 11 : i64} {
  func.func @dqn_kernel(%arg0: i32, %arg1: memref<8x8xf32, #tpu.memory_space<vmem>>, %arg2: memref<8x128xf32, #tpu.memory_space<vmem>>, %arg3: memref<1x128xf32, #tpu.memory_space<vmem>>, %arg4: memref<128x128xf32, #tpu.memory_space<vmem>>, %arg5: memref<1x128xf32, #tpu.memory_space<vmem>>, %arg6: memref<128x128xf32, #tpu.memory_space<vmem>>, %arg7: memref<1x128xf32, #tpu.memory_space<vmem>>, %arg8: memref<8x2xf32, #tpu.memory_space<vmem>>) attributes {dimension_semantics = [#tpu.dimension_semantics<parallel>], iteration_bounds = array<i64: 1>, scalar_prefetch = 0 : i64, scratch_operands = 0 : i64, tpu.core_type = #tpu.core_type<tc>, window_params = [{transform_indices = @transform_0, window_bounds = array<i64: 8, 8>}, {pipeline_mode = #tpu.pipeline_mode<synchronous>, transform_indices = @transform_1, window_bounds = array<i64: 8, 128>}, {pipeline_mode = #tpu.pipeline_mode<synchronous>, transform_indices = @transform_2, window_bounds = array<i64: 1, 128>}, {pipeline_mode = #tpu.pipeline_mode<synchronous>, transform_indices = @transform_3, window_bounds = array<i64: 128, 128>}, {pipeline_mode = #tpu.pipeline_mode<synchronous>, transform_indices = @transform_4, window_bounds = array<i64: 1, 128>}, {pipeline_mode = #tpu.pipeline_mode<synchronous>, transform_indices = @transform_5, window_bounds = array<i64: 128, 128>}, {pipeline_mode = #tpu.pipeline_mode<synchronous>, transform_indices = @transform_6, window_bounds = array<i64: 1, 128>}, {transform_indices = @transform_7, window_bounds = array<i64: 8, 2>}]} {
    %c0 = arith.constant 0 : index
    %c0_0 = arith.constant 0 : index
    %0 = vector.load %arg1[%c0, %c0_0] : memref<8x8xf32, #tpu.memory_space<vmem>>, vector<8x8xf32>
    %c0_1 = arith.constant 0 : index
    %c0_2 = arith.constant 0 : index
    %1 = vector.load %arg2[%c0_1, %c0_2] : memref<8x128xf32, #tpu.memory_space<vmem>>, vector<8x128xf32>
    %cst = arith.constant dense<0.000000e+00> : vector<8x128xf32>
    %2 = tpu.matmul %0, %1, %cst {dimension_numbers = #tpu.dot_dimension_numbers<[1], [0], [0], [1], [0, 0, 1, 1], [], []>} : vector<8x8xf32>, vector<8x128xf32>, vector<8x128xf32> -> vector<8x128xf32>
    %c0_3 = arith.constant 0 : index
    %c0_4 = arith.constant 0 : index
    %3 = vector.load %arg3[%c0_3, %c0_4] : memref<1x128xf32, #tpu.memory_space<vmem>>, vector<1x128xf32>
    %4 = vector.broadcast %3 : vector<1x128xf32> to vector<8x128xf32>
    %5 = arith.addf %2, %4 : vector<8x128xf32>
    %cst_5 = arith.constant 0.000000e+00 : f32
    %6 = vector.broadcast %cst_5 : f32 to vector<8x128xf32>
    %7 = arith.maximumf %5, %6 : vector<8x128xf32>
    %c0_6 = arith.constant 0 : index
    %c0_7 = arith.constant 0 : index
    %8 = vector.load %arg4[%c0_6, %c0_7] : memref<128x128xf32, #tpu.memory_space<vmem>>, vector<128x128xf32>
    %cst_8 = arith.constant dense<0.000000e+00> : vector<8x128xf32>
    %9 = tpu.matmul %7, %8, %cst_8 {dimension_numbers = #tpu.dot_dimension_numbers<[1], [0], [0], [1], [0, 0, 1, 1], [], []>} : vector<8x128xf32>, vector<128x128xf32>, vector<8x128xf32> -> vector<8x128xf32>
    %c0_9 = arith.constant 0 : index
    %c0_10 = arith.constant 0 : index
    %10 = vector.load %arg5[%c0_9, %c0_10] : memref<1x128xf32, #tpu.memory_space<vmem>>, vector<1x128xf32>
    %11 = vector.broadcast %10 : vector<1x128xf32> to vector<8x128xf32>
    %12 = arith.addf %9, %11 : vector<8x128xf32>
    %cst_11 = arith.constant 0.000000e+00 : f32
    %13 = vector.broadcast %cst_11 : f32 to vector<8x128xf32>
    %14 = arith.maximumf %12, %13 : vector<8x128xf32>
    %c0_12 = arith.constant 0 : index
    %c0_13 = arith.constant 0 : index
    %15 = vector.load %arg6[%c0_12, %c0_13] : memref<128x128xf32, #tpu.memory_space<vmem>>, vector<128x128xf32>
    %cst_14 = arith.constant dense<0.000000e+00> : vector<8x128xf32>
    %16 = tpu.matmul %14, %15, %cst_14 {dimension_numbers = #tpu.dot_dimension_numbers<[1], [0], [0], [1], [0, 0, 1, 1], [], []>} : vector<8x128xf32>, vector<128x128xf32>, vector<8x128xf32> -> vector<8x128xf32>
    %c0_15 = arith.constant 0 : index
    %c0_16 = arith.constant 0 : index
    %17 = vector.load %arg7[%c0_15, %c0_16] : memref<1x128xf32, #tpu.memory_space<vmem>>, vector<1x128xf32>
    %18 = vector.broadcast %17 : vector<1x128xf32> to vector<8x128xf32>
    %19 = arith.addf %16, %18 : vector<8x128xf32>
    %20 = vector.extract_strided_slice %19 {offsets = [0, 0], sizes = [8, 2], strides = [1, 1]} : vector<8x128xf32> to vector<8x2xf32>
    %c0_17 = arith.constant 0 : index
    %c0_18 = arith.constant 0 : index
    %21 = vector.load %arg8[%c0_17, %c0_18] : memref<8x2xf32, #tpu.memory_space<vmem>>, vector<8x2xf32>
    tpu.vector_store %arg8[%c0_17, %c0_18], %20 {strides = array<i32>} : memref<8x2xf32, #tpu.memory_space<vmem>>, vector<8x2xf32>,
    return
  }
  func.func @transform_0(%arg0: i32) -> (i32, i32) {
    %c0_i32 = arith.constant 0 : i32
    %c0_i32_0 = arith.constant 0 : i32
    return %arg0, %c0_i32 : i32, i32
  }
  func.func @transform_1(%arg0: i32) -> (i32, i32) {
    %c0_i32 = arith.constant 0 : i32
    %c0_i32_0 = arith.constant 0 : i32
    %c0_i32_1 = arith.constant 0 : i32
    return %c0_i32, %c0_i32_0 : i32, i32
  }
  func.func @transform_2(%arg0: i32) -> (i32, i32) {
    %c0_i32 = arith.constant 0 : i32
    %c0_i32_0 = arith.constant 0 : i32
    %c0_i32_1 = arith.constant 0 : i32
    return %c0_i32, %c0_i32_0 : i32, i32
  }
  func.func @transform_3(%arg0: i32) -> (i32, i32) {
    %c0_i32 = arith.constant 0 : i32
    %c0_i32_0 = arith.constant 0 : i32
    %c0_i32_1 = arith.constant 0 : i32
    return %c0_i32, %c0_i32_0 : i32, i32
  }
  func.func @transform_4(%arg0: i32) -> (i32, i32) {
    %c0_i32 = arith.constant 0 : i32
    %c0_i32_0 = arith.constant 0 : i32
    %c0_i32_1 = arith.constant 0 : i32
    return %c0_i32, %c0_i32_0 : i32, i32
  }
  func.func @transform_5(%arg0: i32) -> (i32, i32) {
    %c0_i32 = arith.constant 0 : i32
    %c0_i32_0 = arith.constant 0 : i32
    %c0_i32_1 = arith.constant 0 : i32
    return %c0_i32, %c0_i32_0 : i32, i32
  }
  func.func @transform_6(%arg0: i32) -> (i32, i32) {
    %c0_i32 = arith.constant 0 : i32
    %c0_i32_0 = arith.constant 0 : i32
    %c0_i32_1 = arith.constant 0 : i32
    return %c0_i32, %c0_i32_0 : i32, i32
  }
  func.func @transform_7(%arg0: i32) -> (i32, i32) {
    %c0_i32 = arith.constant 0 : i32
    %c0_i32_0 = arith.constant 0 : i32
    return %arg0, %c0_i32 : i32, i32
  }
}

</mosaic_0001>

<bundles_post_ra>
// kernel: tpu_custom_call.1
= control target key start
LH: loop header
LB: loop body
LE: loop exit
PB: predicated region body
PF: predicated region fallthrough
CT: control target
= control target key end

     0   :  { %12 = vsyncpa [#allocation3], 0  ;;  %s751_s0 = inlined_call_operand.hbm [shape: f32[8,8], index: 0, kind: input, shape index: {}]   ;;  %s752_s1 = inlined_call_operand.hbm [shape: f32[8,128], index: 1, kind: input, shape index: {}]   ;;  %s753_s2 = inlined_call_operand.vmem [shape: f32[1,128], index: 2, kind: input, shape index: {}]   ;;  %s754_s3 = inlined_call_operand.hbm [shape: f32[128,128], index: 3, kind: input, shape index: {}]   ;;  %s755_s4 = inlined_call_operand.vmem [shape: f32[1,128], index: 4, kind: input, shape index: {}]   ;;  %s756_s5 = inlined_call_operand.hbm [shape: f32[128,128], index: 5, kind: input, shape index: {}]   ;;  %s757_s6 = inlined_call_operand.vmem [shape: f32[1,128], index: 6, kind: input, shape index: {}]   ;;  %s758_s7 = inlined_call_operand.vmem [shape: f32[8,2], index: 7, kind: output, shape index: {}]  }
   0x1   :  { %13 = vsyncpa [#allocation5], 0 }
   0x2   :  { %14 = vsyncpa [#allocation8], 0  ;;  %s623_s24 = smov [#allocation4]   ;;  %s624_s26 = smov [#allocation2]  }
   0x3   :  { %s31_s25 = sshll.u32 %s623_s24, 4  ;;  %s21_s27 = sshll.u32 %s624_s26, 4  ;;  %s32_s25 = int_to_ptr.vmem [resolvable:$true] %s31_s25  ;;  %s22_s27 = int_to_ptr.vmem [resolvable:$true] %s21_s27 }
   0x4   :  { %s529_s30 = scalar_lea.hbm %s752_s1, 128 }
   0x5   :  { %p530_p0 = scmp.ne.s32.totalorder %s752_s1, %s529_s30  ;;  %p533_p1 = scmp.lt.u32.totalorder %s529_s30, %s752_s1 }
   0x7   :  { %p535_p2 = pnand %p533_p1, %p530_p0 }
   0x9   :  { %538 = shalt.err (!%p535_p2)
}
   0xa   :  { %s539_s12 = scalar_lea.vmem %s32_s25, 128  ;;  %p544_p4 = scmp.lt.s32.totalorder %s32_s25, %s32_s25 }
   0xb   :  { %p540_p3 = scmp.ne.s32.totalorder %s32_s25, %s539_s12  ;;  %p545_p5 = scmp.lt.s32.totalorder %s539_s12, %s539_s12 }
   0xd   :  { %p546_p6 = por %p545_p5, %p544_p4 }
   0xf   :  { %p547_p7 = pnand %p546_p6, %p540_p3 }
  0x11   :  { %550 = shalt.err (!%p547_p7)
}
  0x12   :  { %34 = dma.hbm_to_vmem [thread:$0]  %s752_s1, 128, %s32_s25, [#allocation5]  }
  0x13   :  { %s551_s17 = scalar_lea.hbm %s751_s0, 128 }
  0x14   :  { %p552_p8 = scmp.ne.s32.totalorder %s751_s0, %s551_s17  ;;  %p555_p9 = scmp.lt.u32.totalorder %s551_s17, %s751_s0 }
  0x16   :  { %p557_p10 = pnand %p555_p9, %p552_p8 }
  0x18   :  { %560 = shalt.err (!%p557_p10)
}
  0x19   :  { %s561_s22 = scalar_lea.vmem %s22_s27, 128  ;;  %p566_p12 = scmp.lt.s32.totalorder %s22_s27, %s22_s27 }
  0x1a   :  { %p562_p11 = scmp.ne.s32.totalorder %s22_s27, %s561_s22  ;;  %p567_p13 = scmp.lt.s32.totalorder %s561_s22, %s561_s22 }
  0x1c   :  { %p568_p0 = por %p567_p13, %p566_p12 }
  0x1e   :  { %p569_p1 = pnand %p568_p0, %p562_p11 }
  0x20   :  { %572 = shalt.err (!%p569_p1)
}
  0x21   :  { %24 = dma.hbm_to_vmem [thread:$0]  %s751_s0, 128, %s22_s27, [#allocation3]  }
  0x22   :  { %s625_s24 = smov [#allocation6]   ;;  %s573_s29 = scalar_lea.hbm %s754_s3, 2048 }
  0x23   :  { %s42_s25 = sshll.u32 %s625_s24, 4  ;;  %p574_p2 = scmp.ne.s32.totalorder %s754_s3, %s573_s29  ;;  %s43_s25 = int_to_ptr.vmem [resolvable:$true] %s42_s25 }
  0x24   :  { %p577_p3 = scmp.lt.u32.totalorder %s573_s29, %s754_s3 }
  0x26   :  { %p579_p4 = pnand %p577_p3, %p574_p2 }
  0x28   :  { %582 = shalt.err (!%p579_p4)
}
  0x29   :  { %s583_s11 = scalar_lea.vmem %s43_s25, 2048  ;;  %p588_p6 = scmp.lt.s32.totalorder %s43_s25, %s43_s25 }
  0x2a   :  { %p584_p5 = scmp.ne.s32.totalorder %s43_s25, %s583_s11  ;;  %p589_p7 = scmp.lt.s32.totalorder %s583_s11, %s583_s11 }
  0x2c   :  { %p590_p8 = por %p589_p7, %p588_p6 }
  0x2e   :  { %p591_p9 = pnand %p590_p8, %p584_p5 }
  0x30   :  { %594 = shalt.err (!%p591_p9)
}
  0x31   :  { %s626_s0 = smov 128   ;;  %s627_s27 = smov 8  }
  0x32   :  { %48 = dma.hbm_to_vmem [thread:$0]  %s754_s3, 2048, %s43_s25, [#allocation5], %s626_s0, %s626_s0, %s627_s27  }
  0x33   :  { %s628_s14 = smov [#allocation7]   ;;  %s595_s18 = scalar_lea.hbm %s756_s5, 2048 }
  0x34   :  { %s56_s15 = sshll.u32 %s628_s14, 4  ;;  %p596_p10 = scmp.ne.s32.totalorder %s756_s5, %s595_s18  ;;  %s57_s15 = int_to_ptr.vmem [resolvable:$true] %s56_s15 }
  0x35   :  { %p599_p11 = scmp.lt.u32.totalorder %s595_s18, %s756_s5 }
  0x37   :  { %p601_p12 = pnand %p599_p11, %p596_p10 }
  0x39   :  { %604 = shalt.err (!%p601_p12)
}
  0x3a   :  { %s605_s1 = scalar_lea.vmem %s57_s15, 2048  ;;  %p610_p0 = scmp.lt.s32.totalorder %s57_s15, %s57_s15 }
  0x3b   :  { %p606_p13 = scmp.ne.s32.totalorder %s57_s15, %s605_s1  ;;  %p611_p1 = scmp.lt.s32.totalorder %s605_s1, %s605_s1 }
  0x3d   :  { %p612_p2 = por %p611_p1, %p610_p0 }
  0x3f   :  { %p613_p3 = pnand %p612_p2, %p606_p13 }
  0x41   :  { %616 = shalt.err (!%p613_p3)
}
  0x42   :  { %62 = dma.hbm_to_vmem [thread:$0]  %s756_s5, 2048, %s57_s15, [#allocation8], %s626_s0, %s626_s0, %s627_s27  }
  0x43   :  { %617 = dma.done.wait [#allocation3], 128  }
  0x44   :  { %618 = vsyncadd [#allocation3], 4294967168 }
  0x45   :  { %619 = dma.done.wait [#allocation5], 2176  }
  0x46   :  { %620 = vsyncadd [#allocation5], 4294965120 }
  0x47   :  { %621 = dma.done.wait [#allocation8], 2048  }
  0x48   :  { %622 = vsyncadd [#allocation8], 4294965248  ;;  %v629_v0 = vmov 0.0   ;;  %vm630_vm0 = vmmov 0   ;;  %v631_v1 = vmov 0.0|0.0   ;;  %vm86_vm1 = vcmask 64512  }
  0x49   :  { %397 = vmatprep.subr.mxu0 %v629_v0  ;;  %399 = vmatprep.mubr.msk.f32.mxu0 %vm630_vm0, %v629_v0  ;;  %v78_v2 = vld [vmem:[#allocation4] sm:$0xff]  ;;  %v77_v3 = vld [vmem:[#allocation2] sm:$0xff]  ;;  %v161_v4 = vld [vmem:[#allocation6] sm:$0xff]  ;;  %vm348_vm2 = vcmask 15360  }
  0x4a   :  { %472 = vmatprep.subr.bf16.mxu1 %v631_v1  ;;  %434 = vmatprep.mubr.msk.f32.mxu1 %vm630_vm0, %v629_v0  ;;  %v162_v5 = vld [vmem:[#allocation6 + $0x8] sm:$0xff]  ;;  %v163_v6 = vld [vmem:[#allocation6 + $0x10] sm:$0xff]  ;;  %v164_v7 = vld [vmem:[#allocation6 + $0x18] sm:$0xff] }
  0x4b   :  { %398 = vmatpush3.msra.mxu0 %v78_v2  ;;  %v473_v8 = vpack.c.bf16 %v162_v5, %v161_v4  ;;  %v476_v9 = vpack.c.bf16 %v164_v7, %v163_v6  ;;  %v165_v10 = vld [vmem:[#allocation6 + $0x20] sm:$0xff]  ;;  %v166_v11 = vld [vmem:[#allocation6 + $0x28] sm:$0xff]  ;;  %v167_v13 = vld [vmem:[#allocation6 + $0x30] sm:$0xff] }
  0x4c   :  { %400 = vmatmul.mubr.msk.f32.vlgmr.msra.gmra.mrb[0].mxu0 %vm86_vm1, %v77_v3  ;;  %496 = vmatprep.subr.bf16.mxu0 %v631_v1  ;;  %v479_v12 = vpack.c.bf16 %v166_v11, %v165_v10  ;;  %v168_v14 = vld [vmem:[#allocation6 + $0x38] sm:$0xff]  ;;  %v169_v16 = vld [vmem:[#allocation6 + $0x40] sm:$0xff]  ;;  %v170_v17 = vld [vmem:[#allocation6 + $0x48] sm:$0xff] }
  0x4d   :  { %469 = vmatprep.mubr.msk.f32.mxu0 %vm630_vm0, %v629_v0  ;;  %474 = vmatpush3.bf16.msra.mxu1 %v473_v8  ;;  %v482_v15 = vpack.c.bf16 %v168_v14, %v167_v13  ;;  %v485_v18 = vpack.c.bf16 %v170_v17, %v169_v16  ;;  %v171_v19 = vld [vmem:[#allocation6 + $0x50] sm:$0xff]  ;;  %v172_v20 = vld [vmem:[#allocation6 + $0x58] sm:$0xff]  ;;  %v173_v22 = vld [vmem:[#allocation6 + $0x60] sm:$0xff] }
  0x4e   :  { %475 = vmatprep.subr.bf16.mxu1 %v631_v1  ;;  %v488_v21 = vpack.c.bf16 %v172_v20, %v171_v19  ;;  %v174_v23 = vld [vmem:[#allocation6 + $0x68] sm:$0xff]  ;;  %v175_v25 = vld [vmem:[#allocation6 + $0x70] sm:$0xff]  ;;  %v176_v26 = vld [vmem:[#allocation6 + $0x78] sm:$0xff] }
  0x4f   :  { %v491_v24 = vpack.c.bf16 %v174_v23, %v173_v22  ;;  %v494_v27 = vpack.c.bf16 %v176_v26, %v175_v25  ;;  %v255_v28 = vld [vmem:[#allocation7] sm:$0xff]  ;;  %v256_v29 = vld [vmem:[#allocation7 + $0x8] sm:$0xff]  ;;  %v257_v30 = vld [vmem:[#allocation7 + $0x10] sm:$0xff] }
  0x50   :  { %v497_v31 = vpack.c.bf16 %v256_v29, %v255_v28  ;;  %v258_v32 = vld [vmem:[#allocation7 + $0x18] sm:$0xff]  ;;  %v259_v34 = vld [vmem:[#allocation7 + $0x20] sm:$0xff]  ;;  %v260_v35 = vld [vmem:[#allocation7 + $0x28] sm:$0xff] }
  0x51   :  { %477 = vmatpush3.bf16.msra.mxu1 %v476_v9  ;;  %v500_v33 = vpack.c.bf16 %v258_v32, %v257_v30  ;;  %v503_v36 = vpack.c.bf16 %v260_v35, %v259_v34  ;;  %v261_v37 = vld [vmem:[#allocation7 + $0x30] sm:$0xff]  ;;  %v262_v38 = vld [vmem:[#allocation7 + $0x38] sm:$0xff]  ;;  %v263_v40 = vld [vmem:[#allocation7 + $0x40] sm:$0xff] }
  0x52   :  { %478 = vmatprep.subr.bf16.mxu1 %v631_v1  ;;  %498 = vmatpush3.bf16.msra.mxu0 %v497_v31  ;;  %v506_v39 = vpack.c.bf16 %v262_v38, %v261_v37  ;;  %v264_v41 = vld [vmem:[#allocation7 + $0x48] sm:$0xff]  ;;  %v265_v43 = vld [vmem:[#allocation7 + $0x50] sm:$0xff]  ;;  %v266_v44 = vld [vmem:[#allocation7 + $0x58] sm:$0xff] }
  0x53   :  { %499 = vmatprep.subr.bf16.mxu0 %v631_v1  ;;  %v509_v42 = vpack.c.bf16 %v264_v41, %v263_v40  ;;  %v512_v45 = vpack.c.bf16 %v266_v44, %v265_v43  ;;  %v267_v46 = vld [vmem:[#allocation7 + $0x60] sm:$0xff]  ;;  %v268_v47 = vld [vmem:[#allocation7 + $0x68] sm:$0xff]  ;;  %v357_v49 = vld [vmem:[%s753_s2] ss:$0 sm:$0xff] }
  0x54   :  { %v515_v48 = vpack.c.bf16 %v268_v47, %v267_v46  ;;  %v269_v54 = vld [vmem:[#allocation7 + $0x70] sm:$0xff]  ;;  %v270_v55 = vld [vmem:[#allocation7 + $0x78] sm:$0xff] }
  0x55   :  { %480 = vmatpush3.bf16.msra.mxu1 %v479_v12  ;;  %v518_v56 = vpack.c.bf16 %v270_v55, %v269_v54  ;;  %v359_v57 = vld [vmem:[%s755_s4] ss:$0 sm:$0xff] }
  0x56   :  { %481 = vmatprep.subr.bf16.mxu1 %v631_v1  ;;  %501 = vmatpush3.bf16.msra.mxu0 %v500_v33  ;;  %v360_v62 = vld [vmem:[%s757_s6] ss:$0 sm:$0xff] }
  0x57   :  { %502 = vmatprep.subr.bf16.mxu0 %v631_v1 }
  0x59   :  { %483 = vmatpush3.bf16.msra.mxu1 %v482_v15 }
  0x5a   :  { %484 = vmatprep.subr.bf16.mxu1 %v631_v1  ;;  %504 = vmatpush3.bf16.msra.mxu0 %v503_v36 }
  0x5b   :  { %505 = vmatprep.subr.bf16.mxu0 %v631_v1 }
  0x5d   :  { %486 = vmatpush3.bf16.msra.mxu1 %v485_v18 }
  0x5e   :  { %487 = vmatprep.subr.bf16.mxu1 %v631_v1  ;;  %507 = vmatpush3.bf16.msra.mxu0 %v506_v39 }
  0x5f   :  { %508 = vmatprep.subr.bf16.mxu0 %v631_v1 }
  0x61   :  { %489 = vmatpush3.bf16.msra.mxu1 %v488_v21 }
  0x62   :  { %490 = vmatprep.subr.bf16.mxu1 %v631_v1  ;;  %510 = vmatpush3.bf16.msra.mxu0 %v509_v42 }
  0x63   :  { %511 = vmatprep.subr.bf16.mxu0 %v631_v1 }
  0x65   :  { %492 = vmatpush3.bf16.msra.mxu1 %v491_v24 }
  0x66   :  { %493 = vmatprep.subr.bf16.mxu1 %v631_v1  ;;  %513 = vmatpush3.bf16.msra.mxu0 %v512_v45 }
  0x67   :  { %514 = vmatprep.subr.bf16.mxu0 %v631_v1 }
  0x69   :  { %495 = vmatpush3.bf16.msra.mxu1 %v494_v27 }
  0x6a   :  { %516 = vmatpush3.bf16.msra.mxu0 %v515_v48 }
  0x6b   :  { %517 = vmatprep.subr.bf16.mxu0 %v631_v1 }
  0x6e   :  { %519 = vmatpush3.bf16.msra.mxu0 %v518_v56 }
 0x11f   :  { %v156_v50 = vpop.f32.mrb[0].mxu0 }
 0x120   :  { %v157_v51 = vadd.f32 %v357_v49, %v156_v50  ;;  %v401_v52 = vpop.f32.mrb[1].mxu0 }
 0x122   :  { %v160_v53 = vmax.f32 %v157_v51, 0.0 }
 0x124   :  { %435 = vmatmul.mubr.f32.vlgmr.msra.gmra.mrb[0].mxu1 %v160_v53 }
 0x1f7   :  { %v250_v58 = vpop.f32.mrb[0].mxu1 }
 0x1f8   :  { %v251_v59 = vadd.f32 %v359_v57, %v250_v58  ;;  %v436_v60 = vpop.f32.mrb[1].mxu1 }
 0x1fa   :  { %v254_v61 = vmax.f32 %v251_v59, 0.0 }
 0x1fc   :  { %470 = vmatmul.mubr.f32.vlgmr.msra.gmra.mrb[2].mxu0 %v254_v61 }
 0x2cf   :  { %v344_v63 = vpop.f32.mrb[2].mxu0 }
 0x2d0   :  { %v345_v0 = vadd.f32 %v360_v62, %v344_v63  ;;  %v471_v1 = vpop.f32.mrb[3].mxu0 }
 0x2d2   :  { %349 = vst.msk [vmem:[%s758_s7] sm:$0xff] %vm348_vm2, %v345_v0 }
 0x2d3   :  { %354 = vsyncpa [#allocation3], 1 }
 0x2d4   :  { %355 = vsyncpa [#allocation5], 1 }
 0x2d5   :  { %356 = vsyncpa [#allocation8], 1 }

</bundles_post_ra>
